<compile_context>
chip_gen: v6e
topology: v6e:2x2x1
jax: 0.10.0
libtpu: 0.0.40
codegen_flags: <defaults>
</compile_context>

<pallas_src>
import functools

import jax
import jax.numpy as jnp
from jax.experimental import pallas as pl
from jax.experimental.pallas import tpu as pltpu


def _patch_embed_kernel(x_ref, w_ref, b_ref, *rest, use_norm, eps, e_true):
    # x_ref: (tm, K)  w_ref: (K, Ep)  b/gamma/beta: (1, Ep) f32  o_ref: (tm, Ep)
    # Ep is the lane-padded embed dim (multiple of 128); e_true is the real E.
    if use_norm:
        g_ref, beta_ref, o_ref = rest
    else:
        (o_ref,) = rest

    y = jnp.dot(x_ref[...], w_ref[...], preferred_element_type=jnp.float32)
    y = y + b_ref[...]                      # f32 epilogue (also on v5e)
    if use_norm:
        e_pad = y.shape[-1]
        inv_e = jnp.float32(1.0 / e_true)
        # Padded columns of y are exactly zero (zero weight cols + zero bias),
        # so a plain sum already equals the sum over the real E columns.
        mu = jnp.sum(y, axis=-1, keepdims=True) * inv_e
        yc = y - mu
        if e_pad != e_true:
            col = jax.lax.broadcasted_iota(jnp.int32, y.shape, 1)
            yc = jnp.where(col < e_true, yc, 0.0)   # mask pad cols for variance
        var = jnp.sum(yc * yc, axis=-1, keepdims=True) * inv_e
        y = yc * jax.lax.rsqrt(var + eps)
        y = y * g_ref[...] + beta_ref[...]
    o_ref[...] = y.astype(o_ref.dtype)


def _round_up(x, m):
    return ((x + m - 1) // m) * m


def _choose_tm(m_rows, target=1024):
    """Large 8-aligned M tile; keep >=2 grid steps when possible (v7x megacore).

    With K, Ep <= a few hundred, even tm=1024 is only ~1 MiB per buffer, far
    inside every generation's VMEM (v7x: 64 MiB physical / 32 MiB default)."""
    if m_rows <= 8:
        return m_rows
    half = -(-m_rows // 2)                 # ceil(M/2) -> at least 2 grid steps
    return min(target, _round_up(half, 8))


def patch_embed3d(x, weight, bias, gamma=None, beta=None,
                  patch_size=(2, 4, 4), eps=1e-5,
                  matmul_dtype=jnp.bfloat16, channels_last=False):
    """x: (N, C, D, H, W). weight: (E, C, pd, ph, pw). bias: (E,).
    gamma/beta: optional (E,) LayerNorm affine params (norm_layer=nn.LayerNorm).
    matmul_dtype: dtype of the MXU operands (bf16 default; pass jnp.float32 for
    bit-accurate-to-f32 projection). Returns (N, E, D', H', W'), or
    (N, D', H', W', E) when channels_last=True."""
    n, c, d, h, w = x.shape
    pd, ph, pw = patch_size
    e = weight.shape[0]
    out_dtype = x.dtype

    # Same end-padding semantics as the PyTorch forward (zeros at the end).
    pad_d, pad_h, pad_w = (-d) % pd, (-h) % ph, (-w) % pw
    if pad_d or pad_h or pad_w:
        x = jnp.pad(x, ((0, 0), (0, 0), (0, pad_d), (0, pad_h), (0, pad_w)))
    d2, h2, w2 = (d + pad_d) // pd, (h + pad_h) // ph, (w + pad_w) // pw

    K = c * pd * ph * pw
    M = n * d2 * h2 * w2

    # Non-overlapping patches -> rows of a matmul. The producer chain
    # (pad/transpose/reshape/cast) is eligible for fusion into the kernel's
    # input DMA via allow_input_fusion below.
    xp = x.reshape(n, c, d2, pd, h2, ph, w2, pw)
    xp = xp.transpose(0, 2, 4, 6, 1, 3, 5, 7)    # (n, d2, h2, w2, c, pd, ph, pw)
    xm = xp.reshape(M, K)
    wm = weight.reshape(e, K).T                   # (K, E) — conv as matmul

    if matmul_dtype is not None:                  # bf16 MXU operands by default
        xm = xm.astype(matmul_dtype)
        wm = wm.astype(matmul_dtype)

    # Lane-dense output / full-width MXU N: pad E up to a multiple of 128 with
    # zero weight/bias/gamma/beta columns; stripped after the kernel.
    e_pad = _round_up(e, 128)
    if e_pad != e:
        wm = jnp.pad(wm, ((0, 0), (0, e_pad - e)))
    bm = jnp.pad(bias.astype(jnp.float32), (0, e_pad - e)).reshape(1, e_pad)

    use_norm = gamma is not None
    tm = _choose_tm(M)
    grid = (pl.cdiv(M, tm),)                      # ragged last block is masked

    args = [xm, wm, bm]
    in_specs = [
        pl.BlockSpec((tm, K), lambda i: (i, 0)),
        pl.BlockSpec((K, e_pad), lambda i: (0, 0)),
        pl.BlockSpec((1, e_pad), lambda i: (0, 0)),
    ]
    if use_norm:
        gm = jnp.pad(gamma.astype(jnp.float32), (0, e_pad - e)).reshape(1, e_pad)
        btm = jnp.pad(beta.astype(jnp.float32), (0, e_pad - e)).reshape(1, e_pad)
        args += [gm, btm]
        in_specs += [pl.BlockSpec((1, e_pad), lambda i: (0, 0)),
                     pl.BlockSpec((1, e_pad), lambda i: (0, 0))]

    in_bytes = jnp.dtype(xm.dtype).itemsize
    out_bytes = jnp.dtype(out_dtype).itemsize
    cost = pl.CostEstimate(
        flops=2 * M * K * e_pad,
        transcendentals=0,
        bytes_accessed=(M * K * in_bytes + K * e_pad * in_bytes
                        + M * e_pad * out_bytes))

    kernel = functools.partial(_patch_embed_kernel, use_norm=use_norm,
                               eps=eps, e_true=e)

    out = pl.pallas_call(
        kernel,
        out_shape=jax.ShapeDtypeStruct((M, e_pad), out_dtype),
        grid_spec=pltpu.PrefetchScalarGridSpec(
            num_scalar_prefetch=0,
            grid=grid,
            in_specs=in_specs,
            out_specs=pl.BlockSpec((tm, e_pad), lambda i: (i, 0)),
        ),
        compiler_params=pltpu.CompilerParams(
            dimension_semantics=("parallel",),
            # Allow XLA to fuse the patch-extraction producer of xm into the
            # kernel's input fetch instead of materializing it in HBM.
            allow_input_fusion=[True] + [False] * (len(args) - 1),
        ),
        cost_estimate=cost,
    )(*args)

    if e_pad != e:
        out = out[:, :e]                           # drop zero-padded columns
    out = out.reshape(n, d2, h2, w2, e)
    if channels_last:
        return out                                 # (N, D', H', W', E)
    return out.transpose(0, 4, 1, 2, 3)            # (N, E, D', H', W') parity


def _reference(x, weight, bias, gamma, beta, patch_size, eps=1e-5):
    """Plain-JAX reference: pad + Conv3d(stride=kernel=patch) + optional LN."""
    pd, ph, pw = patch_size
    n, c, d, h, w = x.shape
    x = jnp.pad(x, ((0, 0), (0, 0),
                    (0, (-d) % pd), (0, (-h) % ph), (0, (-w) % pw)))
    y = jax.lax.conv_general_dilated(
        x, weight, window_strides=patch_size, padding="VALID",
        dimension_numbers=("NCDHW", "OIDHW", "NCDHW"))
    y = y + bias.reshape(1, -1, 1, 1, 1)
    if gamma is not None:
        yt = jnp.moveaxis(y, 1, -1)                # (N, D', H', W', E)
        mu = jnp.mean(yt, axis=-1, keepdims=True)
        var = jnp.mean((yt - mu) ** 2, axis=-1, keepdims=True)
        yt = (yt - mu) * jax.lax.rsqrt(var + eps) * gamma + beta
        y = jnp.moveaxis(yt, -1, 1)
    return y


if __name__ == "__main__":
    key = jax.random.PRNGKey(0)
    patch_size = (2, 4, 4)
    c, embed_dim = 4, 32
    # Non-divisible spatial dims to exercise the padding + ragged-grid paths.
    n, d, h, w = 2, 5, 9, 10

    k1, k2, k3, k4, k5 = jax.random.split(key, 5)
    x = jax.random.normal(k1, (n, c, d, h, w), jnp.float32)
    weight = jax.random.normal(k2, (embed_dim, c) + patch_size, jnp.float32) * 0.05
    bias = jax.random.normal(k3, (embed_dim,), jnp.float32) * 0.01
    gamma = 1.0 + 0.1 * jax.random.normal(k4, (embed_dim,), jnp.float32)
    beta = 0.1 * jax.random.normal(k5, (embed_dim,), jnp.float32)

    ref = _reference(x, weight, bias, None, None, patch_size)
    ref_n = _reference(x, weight, bias, gamma, beta, patch_size)

    # 1) f32 MXU path (exact-precision check): default module (norm_layer=None).
    out = patch_embed3d(x, weight, bias, patch_size=patch_size,
                        matmul_dtype=jnp.float32)
    out = jax.block_until_ready(out)
    assert out.shape == ref.shape
    assert jnp.allclose(out, ref, atol=1e-4, rtol=1e-4)

    # 2) f32 MXU path with norm_layer=LayerNorm(embed_dim) fused in-kernel.
    out_n = patch_embed3d(x, weight, bias, gamma, beta, patch_size=patch_size,
                          matmul_dtype=jnp.float32)
    out_n = jax.block_until_ready(out_n)
    assert jnp.allclose(out_n, ref_n, atol=1e-4, rtol=1e-4)

    # 3) Default fast path (bf16 MXU operands, f32 accumulate/epilogue).
    out_bf = jax.block_until_ready(
        patch_embed3d(x, weight, bias, patch_size=patch_size))
    assert jnp.allclose(out_bf, ref, atol=3e-2, rtol=3e-2)
    out_bfn = jax.block_until_ready(
        patch_embed3d(x, weight, bias, gamma, beta, patch_size=patch_size))
    assert jnp.allclose(out_bfn, ref_n, atol=3e-2, rtol=3e-2)

    print("KERNEL_OK")
</pallas_src>

<mosaic_0001>
module attributes {stable_mosaic.version = 11 : i64} {
  func.func @_patch_embed_kernel(%arg0: i32, %arg1: memref<32x128xf32, #tpu.memory_space<vmem>>, %arg2: memref<128x128xf32, #tpu.memory_space<vmem>>, %arg3: memref<1x128xf32, #tpu.memory_space<vmem>>, %arg4: memref<32x128xf32, #tpu.memory_space<vmem>>) attributes {dimension_semantics = [#tpu.dimension_semantics<parallel>], iteration_bounds = array<i64: 2>, scalar_prefetch = 0 : i64, scratch_operands = 0 : i64, tpu.core_type = #tpu.core_type<tc>, window_params = [{transform_indices = @transform_0, window_bounds = array<i64: 32, 128>}, {pipeline_mode = #tpu.pipeline_mode<synchronous>, transform_indices = @transform_1, window_bounds = array<i64: 128, 128>}, {pipeline_mode = #tpu.pipeline_mode<synchronous>, transform_indices = @transform_2, window_bounds = array<i64: 1, 128>}, {transform_indices = @transform_3, window_bounds = array<i64: 32, 128>}]} {
    %c0 = arith.constant 0 : index
    %c0_0 = arith.constant 0 : index
    %0 = vector.load %arg1[%c0, %c0_0] : memref<32x128xf32, #tpu.memory_space<vmem>>, vector<32x128xf32>
    %c0_1 = arith.constant 0 : index
    %c0_2 = arith.constant 0 : index
    %1 = vector.load %arg2[%c0_1, %c0_2] : memref<128x128xf32, #tpu.memory_space<vmem>>, vector<128x128xf32>
    %cst = arith.constant dense<0.000000e+00> : vector<32x128xf32>
    %2 = tpu.matmul %0, %1, %cst {dimension_numbers = #tpu.dot_dimension_numbers<[1], [0], [0], [1], [0, 0, 1, 1], [], []>} : vector<32x128xf32>, vector<128x128xf32>, vector<32x128xf32> -> vector<32x128xf32>
    %c0_3 = arith.constant 0 : index
    %c0_4 = arith.constant 0 : index
    %3 = vector.load %arg3[%c0_3, %c0_4] : memref<1x128xf32, #tpu.memory_space<vmem>>, vector<1x128xf32>
    %4 = vector.broadcast %3 : vector<1x128xf32> to vector<32x128xf32>
    %5 = arith.addf %2, %4 : vector<32x128xf32>
    %c0_5 = arith.constant 0 : index
    %c0_6 = arith.constant 0 : index
    %6 = vector.load %arg4[%c0_5, %c0_6] : memref<32x128xf32, #tpu.memory_space<vmem>>, vector<32x128xf32>
    tpu.vector_store %arg4[%c0_5, %c0_6], %5 {strides = array<i32>} : memref<32x128xf32, #tpu.memory_space<vmem>>, vector<32x128xf32>,
    return
  }
  func.func @transform_0(%arg0: i32) -> (i32, i32) {
    %c0_i32 = arith.constant 0 : i32
    %c0_i32_0 = arith.constant 0 : i32
    return %arg0, %c0_i32 : i32, i32
  }
  func.func @transform_1(%arg0: i32) -> (i32, i32) {
    %c0_i32 = arith.constant 0 : i32
    %c0_i32_0 = arith.constant 0 : i32
    %c0_i32_1 = arith.constant 0 : i32
    return %c0_i32, %c0_i32_0 : i32, i32
  }
  func.func @transform_2(%arg0: i32) -> (i32, i32) {
    %c0_i32 = arith.constant 0 : i32
    %c0_i32_0 = arith.constant 0 : i32
    %c0_i32_1 = arith.constant 0 : i32
    return %c0_i32, %c0_i32_0 : i32, i32
  }
  func.func @transform_3(%arg0: i32) -> (i32, i32) {
    %c0_i32 = arith.constant 0 : i32
    %c0_i32_0 = arith.constant 0 : i32
    return %arg0, %c0_i32 : i32, i32
  }
}

</mosaic_0001>

<bundles_post_ra>
// kernel: tpu_custom_call.1
= control target key start
LH: loop header
LB: loop body
LE: loop exit
PB: predicated region body
PF: predicated region fallthrough
CT: control target
= control target key end

     0   :  { %8 = vsyncpa [#allocation3], 0  ;;  %s969_s0 = inlined_call_operand.hbm [shape: f32[54,128], index: 0, kind: input, shape index: {}]   ;;  %s970_s1 = inlined_call_operand.hbm [shape: f32[128,128], index: 1, kind: input, shape index: {}]   ;;  %s971_s2 = inlined_call_operand.vmem [shape: f32[1,128], index: 2, kind: input, shape index: {}]   ;;  %s972_s3 = inlined_call_operand.hbm [shape: f32[54,128], index: 3, kind: output, shape index: {}]  }
   0x1   :  { %10 = vsyncpa [#allocation3 + $0x1], 0 }
   0x2   :  { %11 = vsyncpa [#allocation6], 0 }
   0x3   :  { %12 = vsyncpa [#allocation4], 0 }
   0x4   :  { %14 = vsyncpa [#allocation4 + $0x1], 0  ;;  %s763_s12 = smov 0   ;;  %s765_s13 = smov 0  }
   0x5   :  { %s767_s14 = smov 0   ;;  %s769_s15 = smov 0  }
   0x6 LB: > { %s784_s16 = sadd.s32 4294967295, %s732_s15   ;;  %s439_s17 = sadd.s32 4294967294, %s732_s15   ;;  %s732_s15 = sphi %s769_s15, %s987_s15   ;;  %s728_s14 = sphi %s767_s14, %s986_s14   ;;  %s724_s13 = sphi %s765_s13, %s985_s13   ;;  %s720_s12 = sphi %s763_s12, %s984_s12  }
   0x7   : > { %s788_s18 = sadd.s32 1, %s732_s15   ;;  %s27_s19 = sadd.s32 1, %s728_s14 }
   0x8   : > { %s24_s20 = ssub.s32 %s732_s15, %s788_s18  ;;  %p34_p0 = scmp.ne.s32.totalorder %s728_s14, %s724_s13 }
   0x9   : > { %p25_p1 = scmp.eq.s32.totalorder %s24_s20, 0  ;;  %p35_p2 = scmp.eq.s32.totalorder %s732_s15, 0 }
   0xa   : > { %p40_p3 = scmp.ne.s32.totalorder %s724_s13, %s720_s12  ;;  %p41_p4 = scmp.eq.s32.totalorder %s784_s16, 0 }
   0xb   : > { %s800_s21 = scalar_select %p25_p1, %s728_s14, %s27_s19  }
   0xc   : > { %p802_p5 = por %p35_p2, %p34_p0  ;;  %p808_p6 = por %p41_p4, %p40_p3 }
   0xd   : > { %p106_p7 = scmp.eq.s32.totalorder %s784_s16, 1  ;;  %p112_p8 = scmp.eq.s32.totalorder %s439_s17, 1 }
   0xe   : > { %s976_s23 = scalar_select %p808_p6, 1, 0 }
   0xf   : > { %p440_p9 = scmp.ge.s32.totalorder %s732_s15, 1  ;;  %p119_p10 = scmp.lt.s32.totalorder %s732_s15, 3 }
  0x10   : > { %p815_p11 = por %p106_p7, %p34_p0  ;;  %p819_p12 = por %p112_p8, %p40_p3 }
  0x11   : > { %p823_p13 = pnand %p440_p9, %p119_p10  ;;  %s734_s27 = smov [#allocation5]  }
  0x12   : > { %s977_s24 = scalar_select %p815_p11, 1, 0 }
  0x13   : > { %s978_s25 = scalar_select %p819_p12, 1, 0 }
  0x14   : > { %p562_p1 = pneg %p823_p13  ;;  %s131_s28 = sshll.u32 %s734_s27, 4  ;;  %s132_s28 = int_to_ptr.vmem [resolvable:$true] %s131_s28 }
  0x15   : > { %s623_s29 = scalar_lea.vmem %s132_s28, 2048  ;;  %p631_p8 = scmp.lt.s32.totalorder %s132_s28, %s132_s28 }
  0x16   : > { %p563_p2 = pnand %p562_p1, %p41_p4  ;;  %p624_p7 = scmp.ne.s32.totalorder %s132_s28, %s623_s29 }
  0x17   : > { %p632_p6 = scmp.lt.s32.totalorder %s623_s29, %s623_s29 }
  0x18   : > { %p614_p0 = pneg %p563_p2 }
  0x19   : > { %p633_p12 = por %p632_p6, %p631_p8 }
  0x1a   : > { %p626_p11 = pnand %p624_p7, %p614_p0 }
  0x1c   : > { %p627_p3 = pneg %p626_p11 }
  0x1e   : > { %p634_p9 = pnand %p633_p12, %p627_p3 }
  0x20   : > { %637 = shalt.err (!%p634_p9)
}
  0x21   : > { %s735_s30 = smov 128   ;;  %s736_s4 = smov 8  }
  0x22   : > { %565 = dma.hbm_to_vmem [thread:$0]  (!%p563_p2), %s970_s1, 2048, %s132_s28, [#allocation6], %s735_s30, %s735_s30, %s736_s4  }
  0x23   : > { %p974_p10 = scmp.ge.s32.totalorder %s732_s15, 2 }
  0x25   : > { %144 = sbr.rel (%p974_p10) target bundleno = 74 (0x4a), region = 24 }
  0x2a   : > { %147 = sbr.rel (!%p802_p5) target bundleno = 74 (0x4a), region = 28  ;;  %s148_s7 = sand.u32 (%p802_p5), 1, %s728_s14  }
  0x2b   : > { %s444_s8 = sshll.u32 (%p802_p5), %s732_s15, 2  ;;  %s443_s9 = sshll.u32 (%p802_p5), %s148_s7, 5 }
  0x2c   : > { %s154_s10 = ssub.s32 (%p802_p5), 7, %s444_s8  ;;  %s844_s19 = scalar_lea.sflag (%p802_p5), [#allocation3], %s148_s7 }
  0x2d   : > { %p155_p6 = scmp.lt.s32.totalorder (%p802_p5), %s154_s10, 4  ;;  %s152_s20 = scalar_lea.vmem (%p802_p5), [#allocation2], %s443_s9 }
  0x2f   : > { %s989_s10 = smov (!%p155_p6, %s154_s10), 4 }
  0x30   : > { %s841_s11 = sshll.u32 %s989_s10, 7 }
  0x31   : > { %s159_s17 = ssub.s32 512, %s841_s11 }
  0x32   : > { %160 = vsyncadd %s844_s19, %s159_s17  ;;  %p446_p5 = scmp.ne.s32.totalorder %s841_s11, 0  ;;  %s464_s22 = sshll.u32 %s732_s15, 9 }
  0x33   : > { %s852_s29 = scalar_lea.hbm %s969_s0, %s464_s22  ;;  %s165_s30 = sshll.u32 %s152_s20, 4  ;;  %s854_s30 = int_to_ptr.vmem [resolvable:$true] %s165_s30 }
  0x34   : > { %s638_s4 = scalar_lea.hbm %s852_s29, %s841_s11  ;;  %s642_s7 = scalar_lea.hbm %s969_s0, 896 }
  0x35   : > { %p639_p11 = scmp.ne.s32.totalorder %s852_s29, %s638_s4  ;;  %p643_p2 = scmp.lt.s32.totalorder %s852_s29, %s969_s0 }
  0x36   : > { %p644_p0 = scmp.lt.s32.totalorder %s642_s7, %s638_s4 }
  0x37   : > { %p640_p12 = pnand %p639_p11, %p446_p5 }
  0x38   : > { %p645_p7 = por %p644_p0, %p643_p2 }
  0x39   : > { %p641_p1 = pneg %p640_p12 }
  0x3b   : > { %p646_p3 = pnand %p645_p7, %p641_p1 }
  0x3d   : > { %649 = shalt.err (!%p646_p3)
}
  0x3e   : > { %s650_s10 = scalar_lea.vmem %s854_s30, %s841_s11  ;;  %s737_s17 = smov [#allocation2]  }
  0x3f   : > { %p651_p8 = scmp.ne.s32.totalorder %s854_s30, %s650_s10  ;;  %s654_s20 = sshll.u32 %s737_s17, 4  ;;  %s655_s20 = int_to_ptr.vmem [resolvable:$false] %s654_s20 }
  0x40   : > { %s656_s22 = scalar_lea.vmem %s655_s20, 1024  ;;  %p657_p11 = scmp.lt.s32.totalorder %s854_s30, %s655_s20 }
  0x41   : > { %p652_p9 = pnand %p651_p8, %p446_p5  ;;  %p658_p12 = scmp.lt.s32.totalorder %s656_s22, %s650_s10 }
  0x43   : > { %p653_p6 = pneg %p652_p9  ;;  %p659_p10 = por %p658_p12, %p657_p11 }
  0x45   : > { %p660_p2 = pnand %p659_p10, %p653_p6 }
  0x47   : > { %663 = shalt.err (!%p660_p2)
}
  0x48   : > { %s738_s27 = smov 128   ;;  %s739_s28 = smov 8  }
  0x49   : > { %171 = dma.hbm_to_vmem [thread:$0]  (%p446_p5), %s852_s29, %s841_s11, %s854_s30, %s844_s19, %s738_s27, %s738_s27, %s739_s28  }
  0x4a PF: > { %177 = sbr.rel (%p823_p13) target bundleno = 341 (0x155), region = 32  ;;  %s883_s4 = sand.u32 (!%p823_p13), 1, %s724_s13  }
  0x4b   : > { %s451_s5 = sshll.u32 (!%p823_p13), %s883_s4, 5  ;;  %s180_s6 = scalar_lea.sflag (!%p823_p13), [#allocation3], %s883_s4 }
  0x4c   : > { %s889_s7 = scalar_lea.vmem (!%p823_p13), [#allocation2], %s451_s5  ;;  %p980_p10 = scmp.ne.s32.totalorder (!%p823_p13), %s976_s23, 0 }
  0x4f   : > { %707 = dma.done.wait (%p980_p10), %s180_s6, 512  }
  0x50   : > { %709 = vsyncadd (%p980_p10), %s180_s6, 4294966784 }
  0x51   : > { %711 = dma.done.wait (%p41_p4), [#allocation6], 2048  }
  0x52   : > { %713 = vsyncadd (%p41_p4), [#allocation6], 4294965248  ;;  %v239_v0 = vld [vmem:[#allocation5 + $0x78] sm:$0xff]  ;;  %v238_v1 = vld [vmem:[#allocation5 + $0x70] sm:$0xff]  ;;  %s209_s11 = scalar_lea.vmem [#allocation7], %s451_s5  ;;  %s337_s19 = scalar_lea.sflag [#allocation4], %s883_s4 }
  0x53   : > { %486 = vmatprep.subr.mxu0 %v239_v0  ;;  %524 = vmatprep.subr.mxu1 %v239_v0  ;;  %v237_v2 = vld [vmem:[#allocation5 + $0x68] sm:$0xff]  ;;  %v236_v3 = vld [vmem:[#allocation5 + $0x60] sm:$0xff]  ;;  %v235_v4 = vld [vmem:[#allocation5 + $0x58] sm:$0xff]  ;;  %p981_p4 = scmp.ne.s32.totalorder %s977_s24, 0 }
  0x54   : > { %487 = vmatpush3.msra.mxu0 %v239_v0  ;;  %540 = vmatpush3.msra.mxu1 %v239_v0  ;;  %v234_v5 = vld [vmem:[#allocation5 + $0x50] sm:$0xff]  ;;  %v233_v6 = vld [vmem:[#allocation5 + $0x48] sm:$0xff]  ;;  %v232_v7 = vld [vmem:[#allocation5 + $0x40] sm:$0xff]  ;;  %s456_s29 = sshll.u32 (%p981_p4), %s784_s16, 2 }
  0x55   : > { %488 = vmatprep.subr.mxu0 %v238_v1  ;;  %525 = vmatprep.subr.mxu1 %v238_v1  ;;  %v231_v8 = vld [vmem:[#allocation5 + $0x38] sm:$0xff]  ;;  %v230_v9 = vld [vmem:[#allocation5 + $0x30] sm:$0xff]  ;;  %v229_v10 = vld [vmem:[#allocation5 + $0x28] sm:$0xff]  ;;  %s345_s30 = ssub.s32 (%p981_p4), 7, %s456_s29 }
  0x56   : > { %489 = vmatpush3.msra.mxu0 %v238_v1  ;;  %541 = vmatpush3.msra.mxu1 %v238_v1  ;;  %v228_v11 = vld [vmem:[#allocation5 + $0x20] sm:$0xff]  ;;  %v227_v12 = vld [vmem:[#allocation5 + $0x18] sm:$0xff]  ;;  %v226_v13 = vld [vmem:[#allocation5 + $0x10] sm:$0xff]  ;;  %p346_p13 = scmp.lt.s32.totalorder (%p981_p4), %s345_s30, 4 }
  0x57   : > { %490 = vmatprep.subr.mxu0 %v237_v2  ;;  %526 = vmatprep.subr.mxu1 %v237_v2  ;;  %v225_v14 = vld [vmem:[#allocation5 + $0x8] sm:$0xff]  ;;  %v224_v15 = vld [vmem:[#allocation5] sm:$0xff]  ;;  %v222_v17 = vld [vmem:[%s889_s7 + $0x10] sm:$0xff] }
  0x58   : > { %491 = vmatpush3.msra.mxu0 %v237_v2  ;;  %542 = vmatpush3.msra.mxu1 %v237_v2  ;;  %v220_v16 = vld [vmem:[%s889_s7] sm:$0xff]  ;;  %v221_v18 = vld [vmem:[%s889_s7 + $0x8] sm:$0xff]  ;;  %v223_v19 = vld [vmem:[%s889_s7 + $0x18] sm:$0xff] }
  0x59   : > { %492 = vmatprep.subr.mxu0 %v236_v3  ;;  %527 = vmatprep.subr.mxu1 %v236_v3  ;;  %v454_v20 = vld [vmem:[%s971_s2] ss:$0 sm:$0xff] }
  0x5a   : > { %493 = vmatpush3.msra.mxu0 %v236_v3  ;;  %543 = vmatpush3.msra.mxu1 %v236_v3 }
  0x5b   : > { %494 = vmatprep.subr.mxu0 %v235_v4  ;;  %528 = vmatprep.subr.mxu1 %v235_v4 }
  0x5c   : > { %495 = vmatpush3.msra.mxu0 %v235_v4  ;;  %544 = vmatpush3.msra.mxu1 %v235_v4 }
  0x5d   : > { %496 = vmatprep.subr.mxu0 %v234_v5  ;;  %529 = vmatprep.subr.mxu1 %v234_v5 }
  0x5e   : > { %497 = vmatpush3.msra.mxu0 %v234_v5  ;;  %545 = vmatpush3.msra.mxu1 %v234_v5 }
  0x5f   : > { %498 = vmatprep.subr.mxu0 %v233_v6  ;;  %530 = vmatprep.subr.mxu1 %v233_v6 }
  0x60   : > { %499 = vmatpush3.msra.mxu0 %v233_v6  ;;  %546 = vmatpush3.msra.mxu1 %v233_v6 }
  0x61   : > { %500 = vmatprep.subr.mxu0 %v232_v7  ;;  %531 = vmatprep.subr.mxu1 %v232_v7 }
  0x62   : > { %501 = vmatpush3.msra.mxu0 %v232_v7  ;;  %547 = vmatpush3.msra.mxu1 %v232_v7 }
  0x63   : > { %502 = vmatprep.subr.mxu0 %v231_v8  ;;  %532 = vmatprep.subr.mxu1 %v231_v8 }
  0x64   : > { %503 = vmatpush3.msra.mxu0 %v231_v8  ;;  %548 = vmatpush3.msra.mxu1 %v231_v8 }
  0x65   : > { %504 = vmatprep.subr.mxu0 %v230_v9  ;;  %533 = vmatprep.subr.mxu1 %v230_v9 }
  0x66   : > { %505 = vmatpush3.msra.mxu0 %v230_v9  ;;  %549 = vmatpush3.msra.mxu1 %v230_v9 }
  0x67   : > { %506 = vmatprep.subr.mxu0 %v229_v10  ;;  %534 = vmatprep.subr.mxu1 %v229_v10 }
  0x68   : > { %507 = vmatpush3.msra.mxu0 %v229_v10  ;;  %550 = vmatpush3.msra.mxu1 %v229_v10 }
  0x69   : > { %508 = vmatprep.subr.mxu0 %v228_v11  ;;  %535 = vmatprep.subr.mxu1 %v228_v11 }
  0x6a   : > { %509 = vmatpush3.msra.mxu0 %v228_v11  ;;  %551 = vmatpush3.msra.mxu1 %v228_v11 }
  0x6b   : > { %510 = vmatprep.subr.mxu0 %v227_v12  ;;  %536 = vmatprep.subr.mxu1 %v227_v12 }
  0x6c   : > { %511 = vmatpush3.msra.mxu0 %v227_v12  ;;  %552 = vmatpush3.msra.mxu1 %v227_v12 }
  0x6d   : > { %512 = vmatprep.subr.mxu0 %v226_v13  ;;  %537 = vmatprep.subr.mxu1 %v226_v13 }
  0x6e   : > { %513 = vmatpush3.msra.mxu0 %v226_v13  ;;  %553 = vmatpush3.msra.mxu1 %v226_v13 }
  0x6f   : > { %514 = vmatprep.subr.mxu0 %v225_v14  ;;  %538 = vmatprep.subr.mxu1 %v225_v14 }
  0x70   : > { %515 = vmatpush3.msra.mxu0 %v225_v14  ;;  %554 = vmatpush3.msra.mxu1 %v225_v14 }
  0x71   : > { %516 = vmatprep.subr.mxu0 %v224_v15  ;;  %539 = vmatprep.subr.mxu1 %v224_v15 }
  0x72   : > { %517 = vmatpush3.msra.mxu0 %v224_v15  ;;  %555 = vmatpush3.msra.mxu1 %v224_v15 }
  0x73   : > { %518 = vmatprep.mubr.f32.mxu0 %v220_v16  ;;  %521 = vmatprep.mubr.f32.mxu1 %v222_v17 }
  0x74   : > { %519 = vmatmul.mubr.f32.vlgmr.msra.gmra.mxu0 %v221_v18  ;;  %522 = vmatmul.mubr.f32.vlgmr.msra.gmra.mxu1 %v223_v19 }
 0x134   : > { %v520_v21 = vpop.f32.mrf.mxu0  ;;  %v523_v22 = vpop.f32.mrf.mxu1 }
 0x135   : > { %v319_v23 = vadd.f32 %v520_v21, %v454_v20  ;;  %v329_v24 = vadd.f32 %v523_v22, %v454_v20  ;;  %343 = sbr.rel (!%p981_p4) target bundleno = 341 (0x155), region = 44 }
 0x136   : > { %v313_v25 = vpop.f32.mrf.mxu0  ;;  %v323_v26 = vpop.f32.mrf.mxu1 }
 0x137   : > { %333 = vst [vmem:[%s209_s11 + $0x8] sm:$0xff] %v319_v23  ;;  %335 = vst [vmem:[%s209_s11 + $0x18] sm:$0xff] %v329_v24  ;;  %v314_v27 = vadd.f32 %v454_v20, %v313_v25  ;;  %v324_v28 = vadd.f32 %v454_v20, %v323_v26 }
 0x139   : > { %332 = vst [vmem:[%s209_s11] sm:$0xff] %v314_v27  ;;  %334 = vst [vmem:[%s209_s11 + $0x10] sm:$0xff] %v324_v28 }
 0x13a   : > { %s991_s30 = smov (!%p346_p13, %s345_s30), 4 }
 0x13b   : > { %s912_s8 = sshll.u32 %s991_s30, 7 }
 0x13c   : > { %s350_s9 = ssub.s32 512, %s912_s8 }
 0x13d   : > { %351 = vsyncadd %s337_s19, %s350_s9  ;;  %p458_p5 = scmp.ne.s32.totalorder %s912_s8, 0  ;;  %s465_s10 = sshll.u32 %s784_s16, 9 }
 0x13e   : > { %s922_s20 = scalar_lea.hbm %s972_s3, %s465_s10  ;;  %s356_s22 = sshll.u32 %s209_s11, 4  ;;  %s924_s22 = int_to_ptr.vmem [resolvable:$true] %s356_s22 }
 0x13f   : > { %s664_s27 = scalar_lea.vmem %s924_s22, %s912_s8  ;;  %s740_s28 = smov [#allocation7]  }
 0x140   : > { %p665_p1 = scmp.ne.s32.totalorder %s924_s22, %s664_s27  ;;  %s668_s5 = sshll.u32 %s740_s28, 4  ;;  %s669_s5 = int_to_ptr.vmem [resolvable:$false] %s668_s5 }
 0x141   : > { %s670_s16 = scalar_lea.vmem %s669_s5, 1024  ;;  %p671_p3 = scmp.lt.s32.totalorder %s924_s22, %s669_s5 }
 0x142   : > { %p666_p0 = pnand %p665_p1, %p458_p5  ;;  %p672_p8 = scmp.lt.s32.totalorder %s670_s16, %s664_s27 }
 0x144   : > { %p667_p7 = pneg %p666_p0  ;;  %p673_p9 = por %p672_p8, %p671_p3 }
 0x146   : > { %p674_p6 = pnand %p673_p9, %p667_p7 }
 0x148   : > { %677 = shalt.err (!%p674_p6)
}
 0x149   : > { %s678_s6 = scalar_lea.hbm %s922_s20, %s912_s8  ;;  %s682_s26 = scalar_lea.hbm %s972_s3, 896 }
 0x14a   : > { %p679_p11 = scmp.ne.s32.totalorder %s922_s20, %s678_s6  ;;  %p683_p10 = scmp.lt.s32.totalorder %s922_s20, %s972_s3 }
 0x14b   : > { %p684_p4 = scmp.lt.s32.totalorder %s682_s26, %s678_s6 }
 0x14c   : > { %p680_p12 = pnand %p679_p11, %p458_p5 }
 0x14d   : > { %p685_p13 = por %p684_p4, %p683_p10 }
 0x14e   : > { %p681_p2 = pneg %p680_p12 }
 0x150   : > { %p686_p1 = pnand %p685_p13, %p681_p2 }
 0x152   : > { %689 = shalt.err (!%p686_p1)
}
 0x153   : > { %s741_s30 = smov 128   ;;  %s742_s9 = smov 8  }
 0x154   : > { %362 = dma.vmem_to_hbm [thread:$0]  (%p458_p5), %s924_s22, %s912_s8, %s922_s20, %s337_s19, %s741_s30, %s741_s30, %s742_s9  }
 0x155 PF: > { %s371_s10 = sand.u32 1, %s720_s12   ;;  %p982_p0 = scmp.ne.s32.totalorder %s978_s25, 0 }
 0x156   : > { %p983_p7 = scmp.ge.s32.totalorder %s732_s15, 2  ;;  %s372_s24 = scalar_lea.sflag [#allocation4], %s371_s10 }
 0x158   : > { %p567_p3 = pnand %p983_p7, %p982_p0 }
 0x15a   : > { %p568_p8 = pneg %p567_p3 }
 0x15c   : > { %715 = dma.done.wait (%p568_p8), %s372_s24, 512  }
 0x15d   : > { %717 = vsyncadd (%p568_p8), %s372_s24, 4294966784  ;;  %p17_p9 = scmp.ge.s32.totalorder %s788_s18, 4   ;;  %s984_s12 = smov %s724_s13 }
 0x15e   : > { %s985_s13 = smov %s728_s14  ;;  %s986_s14 = smov %s800_s21 }
 0x15f   : > { %s987_s15 = smov %s788_s18  ;;  %19 = sbr.rel (!%p17_p9) target bundleno = 6 (0x6), region = 81 }
 0x164   :  { %377 = vsyncpa [#allocation3], 1 }
 0x165   :  { %379 = vsyncpa [#allocation3 + $0x1], 1 }
 0x166   :  { %380 = vsyncpa [#allocation6], 1 }
 0x167   :  { %381 = vsyncpa [#allocation4], 1 }
 0x168   :  { %383 = vsyncpa [#allocation4 + $0x1], 1 }

</bundles_post_ra>
